<compile_context>
chip_gen: v7x
topology: tpu7x:2x2x1
jax: 0.10.0
libtpu: 0.0.40
codegen_flags: <defaults>
</compile_context>

<pallas_src>
import math

import jax
import jax.numpy as jnp
from jax.experimental import pallas as pl
from jax.experimental.pallas import tpu as pltpu


def _linear_kernel(x_ref, w_ref, b_ref, o_ref, acc_ref):
    # x_ref: (tm, tk)   w_ref: (tn, tk)   b_ref: (1, tn)
    # o_ref: (tm, tn)   acc_ref: (tm, tn) f32 scratch
    k = pl.program_id(2)

    @pl.when(k == 0)
    def _init():
        # Fold the bias add into accumulator init (saves a per-tile VPU add).
        acc_ref[...] = jnp.broadcast_to(
            b_ref[...].astype(jnp.float32), acc_ref.shape
        )

    # Contract on the last axis of both operands: (tm, tk) x (tn, tk) -> (tm, tn).
    acc_ref[...] += jax.lax.dot_general(
        x_ref[...],
        w_ref[...],
        dimension_numbers=(((1,), (1,)), ((), ())),
        preferred_element_type=jnp.float32,
    )

    @pl.when(k == pl.num_programs(2) - 1)
    def _store():
        o_ref[...] = acc_ref[...].astype(o_ref.dtype)


def _round_up(x, m):
    return ((x + m - 1) // m) * m


def linear_decoder_forward(x, weight, bias, *, tm=512, tn=512, tk=512):
    """x: (..., in_features); weight: (out_features, in_features); bias: (out_features,)."""
    out_features, in_features = weight.shape
    lead_shape = x.shape[:-1]
    m = math.prod(lead_shape) if lead_shape else 1

    # Clamp tiles to (8, 128)-aligned sizes that never exceed the padded problem.
    tm = min(tm, _round_up(m, 8))
    tn = min(tn, _round_up(out_features, 128))
    tk = min(tk, _round_up(in_features, 128))

    mp = _round_up(m, tm)
    np_ = _round_up(out_features, tn)
    kp = _round_up(in_features, tk)

    x2d = x.reshape(m, in_features)
    if (mp, kp) != (m, in_features):
        x2d = jnp.pad(x2d, ((0, mp - m), (0, kp - in_features)))

    w = weight  # keep PyTorch (N, K) layout; no HBM transpose copy
    if (np_, kp) != (out_features, in_features):
        w = jnp.pad(w, ((0, np_ - out_features), (0, kp - in_features)))

    b2d = bias.reshape(1, out_features)
    if np_ != out_features:
        b2d = jnp.pad(b2d, ((0, 0), (0, np_ - out_features)))

    grid = (mp // tm, np_ // tn, kp // tk)
    itemsize = jnp.dtype(x.dtype).itemsize

    out2d = pl.pallas_call(
        _linear_kernel,
        out_shape=jax.ShapeDtypeStruct((mp, np_), x.dtype),
        grid_spec=pltpu.PrefetchScalarGridSpec(
            num_scalar_prefetch=0,
            grid=grid,
            in_specs=[
                pl.BlockSpec((tm, tk), lambda i, j, k: (i, k)),   # x tile
                pl.BlockSpec((tn, tk), lambda i, j, k: (j, k)),   # weight tile (N, K)
                pl.BlockSpec((1, tn), lambda i, j, k: (0, j)),    # bias tile
            ],
            out_specs=pl.BlockSpec((tm, tn), lambda i, j, k: (i, j)),
            scratch_shapes=[pltpu.VMEM((tm, tn), jnp.float32)],
        ),
        compiler_params=pltpu.CompilerParams(
            dimension_semantics=("parallel", "parallel", "arbitrary"),
        ),
        cost_estimate=pl.CostEstimate(
            flops=2 * mp * np_ * kp,
            transcendentals=0,
            bytes_accessed=(mp * kp + np_ * kp + mp * np_ + np_) * itemsize,
        ),
    )(x2d, w, b2d)

    out2d = out2d[:m, :out_features]
    return out2d.reshape(*lead_shape, out_features)


def init_linear_params(key, in_features, out_features, dtype=jnp.float32):
    # Matches PyTorch nn.Linear default init: U(-1/sqrt(in), 1/sqrt(in)).
    kw, kb = jax.random.split(key)
    bound = 1.0 / (in_features ** 0.5)
    weight = jax.random.uniform(
        kw, (out_features, in_features), dtype, minval=-bound, maxval=bound
    )
    bias = jax.random.uniform(
        kb, (out_features,), dtype, minval=-bound, maxval=bound
    )
    return weight, bias


if __name__ == "__main__":
    key = jax.random.PRNGKey(0)
    k_x, k_p = jax.random.split(key)

    batch, seq, in_features, out_features = 2, 8, 32, 16
    x = jax.random.normal(k_x, (batch, seq, in_features), dtype=jnp.float32)
    weight, bias = init_linear_params(k_p, in_features, out_features)

    # NOTE: for production decoder heads, pass bf16 x/weight (f32 accumulation is
    # preserved inside the kernel) to use the full bf16 MXU rate on v6e/v7x.
    out = linear_decoder_forward(x, weight, bias)
    out = jax.block_until_ready(out)

    # Reference check against plain JAX.
    ref = x @ weight.T + bias
    assert out.shape == (batch, seq, out_features)
    assert jnp.allclose(out, ref, atol=1e-3, rtol=1e-3)

    print("KERNEL_OK")
</pallas_src>

<mosaic_0001>
module attributes {stable_mosaic.version = 11 : i64} {
  func.func @_linear_kernel(%arg0: i32, %arg1: i32, %arg2: i32, %arg3: memref<16x128xf32, #tpu.memory_space<vmem>>, %arg4: memref<128x128xf32, #tpu.memory_space<vmem>>, %arg5: memref<1x128xf32, #tpu.memory_space<vmem>>, %arg6: memref<16x128xf32, #tpu.memory_space<vmem>>, %arg7: memref<16x128xf32, #tpu.memory_space<vmem>>) attributes {dimension_semantics = [#tpu.dimension_semantics<parallel>, #tpu.dimension_semantics<parallel>, #tpu.dimension_semantics<arbitrary>], iteration_bounds = array<i64: 1, 1, 1>, scalar_prefetch = 0 : i64, scratch_operands = 1 : i64, tpu.core_type = #tpu.core_type<tc>, window_params = [{transform_indices = @transform_0, window_bounds = array<i64: 16, 128>}, {transform_indices = @transform_1, window_bounds = array<i64: 128, 128>}, {transform_indices = @transform_2, window_bounds = array<i64: 1, 128>}, {transform_indices = @transform_3, window_bounds = array<i64: 16, 128>}]} {
    %c0_i32 = arith.constant 0 : i32
    %0 = arith.cmpi eq, %arg2, %c0_i32 : i32
    %1 = arith.extui %0 : i1 to i32
    %c0_i32_0 = arith.constant 0 : i32
    %2 = arith.cmpi ne, %1, %c0_i32_0 : i32
    scf.if %2 {
      %c0_10 = arith.constant 0 : index
      %c0_11 = arith.constant 0 : index
      %12 = vector.load %arg5[%c0_10, %c0_11] : memref<1x128xf32, #tpu.memory_space<vmem>>, vector<1x128xf32>
      %13 = vector.shape_cast %12 : vector<1x128xf32> to vector<1x128xf32>
      %14 = vector.broadcast %13 : vector<1x128xf32> to vector<16x128xf32>
      %c0_12 = arith.constant 0 : index
      %c0_13 = arith.constant 0 : index
      %15 = vector.load %arg7[%c0_12, %c0_13] : memref<16x128xf32, #tpu.memory_space<vmem>>, vector<16x128xf32>
      tpu.vector_store %arg7[%c0_12, %c0_13], %14 {strides = array<i32>} : memref<16x128xf32, #tpu.memory_space<vmem>>, vector<16x128xf32>,
    } else {
    }
    %c0 = arith.constant 0 : index
    %c0_1 = arith.constant 0 : index
    %3 = vector.load %arg7[%c0, %c0_1] : memref<16x128xf32, #tpu.memory_space<vmem>>, vector<16x128xf32>
    %c0_2 = arith.constant 0 : index
    %c0_3 = arith.constant 0 : index
    %4 = vector.load %arg3[%c0_2, %c0_3] : memref<16x128xf32, #tpu.memory_space<vmem>>, vector<16x128xf32>
    %c0_4 = arith.constant 0 : index
    %c0_5 = arith.constant 0 : index
    %5 = vector.load %arg4[%c0_4, %c0_5] : memref<128x128xf32, #tpu.memory_space<vmem>>, vector<128x128xf32>
    %cst = arith.constant dense<0.000000e+00> : vector<16x128xf32>
    %6 = tpu.matmul %4, %5, %cst {dimension_numbers = #tpu.dot_dimension_numbers<[1], [1], [0], [0], [0, 0, 1, 0], [], []>} : vector<16x128xf32>, vector<128x128xf32>, vector<16x128xf32> -> vector<16x128xf32>
    %7 = arith.addf %3, %6 : vector<16x128xf32>
    %c0_6 = arith.constant 0 : index
    %c0_7 = arith.constant 0 : index
    %8 = vector.load %arg7[%c0_6, %c0_7] : memref<16x128xf32, #tpu.memory_space<vmem>>, vector<16x128xf32>
    tpu.vector_store %arg7[%c0_6, %c0_7], %7 {strides = array<i32>} : memref<16x128xf32, #tpu.memory_space<vmem>>, vector<16x128xf32>,
    %c0_i32_8 = arith.constant 0 : i32
    %9 = arith.cmpi eq, %arg2, %c0_i32_8 : i32
    %10 = arith.extui %9 : i1 to i32
    %c0_i32_9 = arith.constant 0 : i32
    %11 = arith.cmpi ne, %10, %c0_i32_9 : i32
    scf.if %11 {
      %c0_10 = arith.constant 0 : index
      %c0_11 = arith.constant 0 : index
      %12 = vector.load %arg7[%c0_10, %c0_11] : memref<16x128xf32, #tpu.memory_space<vmem>>, vector<16x128xf32>
      %c0_12 = arith.constant 0 : index
      %c0_13 = arith.constant 0 : index
      %13 = vector.load %arg6[%c0_12, %c0_13] : memref<16x128xf32, #tpu.memory_space<vmem>>, vector<16x128xf32>
      tpu.vector_store %arg6[%c0_12, %c0_13], %12 {strides = array<i32>} : memref<16x128xf32, #tpu.memory_space<vmem>>, vector<16x128xf32>,
    } else {
    }
    return
  }
  func.func @transform_0(%arg0: i32, %arg1: i32, %arg2: i32) -> (i32, i32) {
    %c0_i32 = arith.constant 0 : i32
    return %arg0, %arg2 : i32, i32
  }
  func.func @transform_1(%arg0: i32, %arg1: i32, %arg2: i32) -> (i32, i32) {
    %c0_i32 = arith.constant 0 : i32
    return %arg1, %arg2 : i32, i32
  }
  func.func @transform_2(%arg0: i32, %arg1: i32, %arg2: i32) -> (i32, i32) {
    %c0_i32 = arith.constant 0 : i32
    %c0_i32_0 = arith.constant 0 : i32
    return %c0_i32, %arg1 : i32, i32
  }
  func.func @transform_3(%arg0: i32, %arg1: i32, %arg2: i32) -> (i32, i32) {
    %c0_i32 = arith.constant 0 : i32
    return %arg0, %arg1 : i32, i32
  }
}

</mosaic_0001>

<bundles_post_ra>
// kernel: tpu_custom_call.1
= control target key start
LH: loop header
LB: loop body
LE: loop exit
PB: predicated region body
PF: predicated region fallthrough
CT: control target
= control target key end

     0   :  { %8 = vsyncpa [#allocation4], 0  ;;  %s416_s0 = inlined_call_operand.hbm [shape: f32[16,128], index: 0, kind: input, shape index: {}]   ;;  %s417_s1 = inlined_call_operand.hbm [shape: f32[128,128], index: 1, kind: input, shape index: {}]   ;;  %s418_s2 = inlined_call_operand.vmem [shape: f32[1,128], index: 2, kind: input, shape index: {}]   ;;  %s419_s3 = inlined_call_operand.hbm [shape: f32[16,128], index: 3, kind: output, shape index: {}]  }
   0x1   :  { %9 = vsyncpa [#allocation7], 0 }
   0x2   :  { %10 = vsyncpa [#allocation5], 0  ;;  %s343_s12 = smov [#allocation3]   ;;  %s271_s16 = scalar_lea.hbm %s416_s0, 256 }
   0x3   :  { %s16_s13 = sshll.u32 %s343_s12, 4  ;;  %p272_p0 = scmp.ne.s32.totalorder %s416_s0, %s271_s16  ;;  %s17_s13 = int_to_ptr.vmem [resolvable:$true] %s16_s13 }
   0x4   :  { %p275_p1 = scmp.lt.u32.totalorder %s271_s16, %s416_s0 }
   0x6   :  { %p277_p2 = pnand %p275_p1, %p272_p0 }
   0x8   :  { %280 = shalt.err (!%p277_p2)
}
   0x9   :  { %s281_s21 = scalar_lea.vmem %s17_s13, 256  ;;  %p286_p4 = scmp.lt.s32.totalorder %s17_s13, %s17_s13 }
   0xa   :  { %p282_p3 = scmp.ne.s32.totalorder %s17_s13, %s281_s21  ;;  %p287_p5 = scmp.lt.s32.totalorder %s281_s21, %s281_s21 }
   0xc   :  { %p288_p6 = por %p287_p5, %p286_p4 }
   0xe   :  { %p289_p7 = pnand %p288_p6, %p282_p3 }
  0x10   :  { %292 = shalt.err (!%p289_p7)
}
  0x11   :  { %s344_s22 = smov 128   ;;  %s345_s23 = smov 8  }
  0x12   :  { %22 = dma.hbm_to_vmem [thread:$0]  %s416_s0, 256, %s17_s13, [#allocation4], %s344_s22, %s344_s22, %s345_s23  }
  0x13   :  { %s346_s26 = smov [#allocation6]   ;;  %s293_s30 = scalar_lea.hbm %s417_s1, 2048 }
  0x14   :  { %s28_s27 = sshll.u32 %s346_s26, 4  ;;  %p294_p8 = scmp.ne.s32.totalorder %s417_s1, %s293_s30  ;;  %s29_s27 = int_to_ptr.vmem [resolvable:$true] %s28_s27 }
  0x15   :  { %p297_p9 = scmp.lt.u32.totalorder %s293_s30, %s417_s1 }
  0x17   :  { %p299_p10 = pnand %p297_p9, %p294_p8 }
  0x19   :  { %302 = shalt.err (!%p299_p10)
}
  0x1a   :  { %s303_s8 = scalar_lea.vmem %s29_s27, 2048  ;;  %p308_p12 = scmp.lt.s32.totalorder %s29_s27, %s29_s27 }
  0x1b   :  { %p304_p11 = scmp.ne.s32.totalorder %s29_s27, %s303_s8  ;;  %p309_p13 = scmp.lt.s32.totalorder %s303_s8, %s303_s8 }
  0x1d   :  { %p310_p0 = por %p309_p13, %p308_p12 }
  0x1f   :  { %p311_p1 = pnand %p310_p0, %p304_p11 }
  0x21   :  { %314 = shalt.err (!%p311_p1)
}
  0x22   :  { %34 = dma.hbm_to_vmem [thread:$0]  %s417_s1, 2048, %s29_s27, [#allocation7], %s344_s22, %s344_s22, %s345_s23  }
  0x23   :  { %337 = dma.done.wait [#allocation4], 256  }
  0x24   :  { %338 = vsyncadd [#allocation4], 4294967040 }
  0x25   :  { %339 = dma.done.wait [#allocation7], 2048  }
  0x26   :  { %340 = vsyncadd [#allocation7], 4294965248  ;;  %v60_v0 = vld [vmem:[#allocation6] sm:$0xff]  ;;  %v61_v1 = vld [vmem:[#allocation6 + $0x8] sm:$0xff]  ;;  %s347_s11 = smov [#allocation8]  }
  0x27   :  { %v62_v2 = vld [vmem:[#allocation6 + $0x10] sm:$0xff]  ;;  %v234_v3 = vpack.c.bf16 %v61_v1, %v60_v0  ;;  %v63_v4 = vld [vmem:[#allocation6 + $0x18] sm:$0xff]  ;;  %v64_v7 = vld [vmem:[#allocation6 + $0x20] sm:$0xff]  ;;  %s167_s12 = sshll.u32 %s347_s11, 4  ;;  %s168_s12 = int_to_ptr.vmem [resolvable:$true] %s167_s12 }
  0x28   :  { %v238_v5 = vpack.c.bf16 %v63_v4, %v62_v2  ;;  %v58_v6 = vld [vmem:[#allocation3] sm:$0xff]  ;;  %v65_v8 = vld [vmem:[#allocation6 + $0x28] sm:$0xff]  ;;  %v67_v11 = vld [vmem:[#allocation6 + $0x38] sm:$0xff]  ;;  %s315_s13 = scalar_lea.vmem %s168_s12, 256  ;;  %p320_p3 = scmp.lt.s32.totalorder %s168_s12, %s168_s12 }
  0x29   :  { %235 = vmatprep.subr.bf16.mxu0 %v234_v3  ;;  %231 = vmatprep.mubr.f32.mxu0 %v58_v6  ;;  %v242_v9 = vpack.c.bf16 %v65_v8, %v64_v7  ;;  %v66_v10 = vld [vmem:[#allocation6 + $0x30] sm:$0xff]  ;;  %v68_v13 = vld [vmem:[#allocation6 + $0x40] sm:$0xff]  ;;  %v69_v14 = vld [vmem:[#allocation6 + $0x48] sm:$0xff]  ;;  %p316_p2 = scmp.ne.s32.totalorder %s168_s12, %s315_s13  ;;  %p321_p4 = scmp.lt.s32.totalorder %s315_s13, %s315_s13 }
  0x2a   :  { %237 = vmatpush3.bf16.xpose.msra.mxu0 %v234_v3  ;;  %v246_v12 = vpack.c.bf16 %v67_v11, %v66_v10  ;;  %v250_v15 = vpack.c.bf16 %v69_v14, %v68_v13  ;;  %v70_v16 = vld [vmem:[#allocation6 + $0x50] sm:$0xff]  ;;  %v71_v17 = vld [vmem:[#allocation6 + $0x58] sm:$0xff]  ;;  %v72_v19 = vld [vmem:[#allocation6 + $0x60] sm:$0xff] }
  0x2b   :  { %239 = vmatprep.subr.bf16.mxu0 %v238_v5  ;;  %v254_v18 = vpack.c.bf16 %v71_v17, %v70_v16  ;;  %v73_v20 = vld [vmem:[#allocation6 + $0x68] sm:$0xff]  ;;  %v74_v22 = vld [vmem:[#allocation6 + $0x70] sm:$0xff]  ;;  %v75_v23 = vld [vmem:[#allocation6 + $0x78] sm:$0xff]  ;;  %p322_p5 = por %p321_p4, %p320_p3 }
  0x2c   :  { %v258_v21 = vpack.c.bf16 %v73_v20, %v72_v19  ;;  %v262_v24 = vpack.c.bf16 %v75_v23, %v74_v22  ;;  %v59_v25 = vld [vmem:[#allocation3 + $0x8] sm:$0xff]  ;;  %v180_v26 = vld [vmem:[%s418_s2] ss:$0 sm:$0xff] }
  0x2d   :  { %p323_p6 = pnand %p322_p5, %p316_p2 }
  0x32   :  { %241 = vmatpush3.bf16.xpose.msra.mxu0 %v238_v5 }
  0x33   :  { %243 = vmatprep.subr.bf16.mxu0 %v242_v9 }
  0x3a   :  { %245 = vmatpush3.bf16.xpose.msra.mxu0 %v242_v9 }
  0x3b   :  { %247 = vmatprep.subr.bf16.mxu0 %v246_v12 }
  0x42   :  { %249 = vmatpush3.bf16.xpose.msra.mxu0 %v246_v12 }
  0x43   :  { %251 = vmatprep.subr.bf16.mxu0 %v250_v15 }
  0x4a   :  { %253 = vmatpush3.bf16.xpose.msra.mxu0 %v250_v15 }
  0x4b   :  { %255 = vmatprep.subr.bf16.mxu0 %v254_v18 }
  0x52   :  { %257 = vmatpush3.bf16.xpose.msra.mxu0 %v254_v18 }
  0x53   :  { %259 = vmatprep.subr.bf16.mxu0 %v258_v21 }
  0x5a   :  { %261 = vmatpush3.bf16.xpose.msra.mxu0 %v258_v21 }
  0x5b   :  { %263 = vmatprep.subr.bf16.mxu0 %v262_v24 }
  0x62   :  { %265 = vmatpush3.bf16.xpose.msra.mxu0 %v262_v24 }
  0x69   :  { %232 = vmatmul.mubr.f32.vlgmr.msra.gmra.mrb[0].mxu0 %v59_v25 }
 0x13c   :  { %v233_v27 = vpop.f32.mrb[0].mxu0 }
 0x13d   :  { %v152_v28 = vadd.f32 %v233_v27, %v180_v26  ;;  %v142_v29 = vpop.f32.mrb[1].mxu0 }
 0x13e   :  { %v151_v30 = vadd.f32 %v180_v26, %v142_v29 }
 0x13f   :  { %161 = vst [vmem:[#allocation8 + $0x8] sm:$0xff] %v152_v28 }
 0x140   :  { %160 = vst [vmem:[#allocation8] sm:$0xff] %v151_v30 }
 0x141   :  { %326 = shalt.err (!%p323_p6)
}
 0x142   :  { %s327_s2 = scalar_lea.hbm %s419_s3, 256 }
 0x143   :  { %p328_p7 = scmp.ne.s32.totalorder %s419_s3, %s327_s2  ;;  %p331_p8 = scmp.lt.u32.totalorder %s327_s2, %s419_s3 }
 0x145   :  { %p333_p9 = pnand %p331_p8, %p328_p7 }
 0x147   :  { %336 = shalt.err (!%p333_p9)
}
 0x148   :  { %173 = dma.vmem_to_hbm [thread:$0]  %s168_s12, 256, %s419_s3, [#allocation5], %s344_s22, %s344_s22, %s345_s23  }
 0x149   :  { %341 = dma.done.wait [#allocation5], 256  }
 0x14a   :  { %342 = vsyncadd [#allocation5], 4294967040 }
 0x14b   :  { %177 = vsyncpa [#allocation4], 1 }
 0x14c   :  { %178 = vsyncpa [#allocation7], 1 }
 0x14d   :  { %179 = vsyncpa [#allocation5], 1 }

</bundles_post_ra>
